<compile_context>
chip_gen: v7x
topology: tpu7x:2x2x1
jax: 0.10.0
libtpu: 0.0.40
codegen_flags: <defaults>
</compile_context>

<pallas_src>
import functools

import numpy as np

import jax
import jax.numpy as jnp
from jax.experimental import pallas as pl
from jax.experimental.pallas import tpu as pltpu

BN_EPS = 1e-5
POOL = 8
# VMEM budget: even for C0=256 / tm=512 the double-buffered blocks stay < ~6 MiB,
# comfortably under the v7x usable ceiling (~48 MiB of 64 MiB physical); v5e/v6e
# have 128 MiB so the same limit is safe on all three generations.
VMEM_LIMIT = 32 * 1024 * 1024


def _round_up(x, m):
    return ((x + m - 1) // m) * m


def _choose_tiling(m, cap=512, min_tiles=2):
    """Largest M-tile (amortize ~0.35us/step overhead) that still leaves
    >= min_tiles grid steps per batch element (v7x: 2 TCs need >=2 steps each
    for real pipelining); pad M up to the tile multiple instead of shrinking."""
    tm = max(8, min(cap, _round_up(-(-m // min_tiles), 8)))
    return tm, _round_up(m, tm)


# ---------------------------------------------------------------------------
# Pallas kernels
# ---------------------------------------------------------------------------
def conv_bn_relu_kernel(x_ref, w_ref, shift_ref, o_ref):
    """3x3/stride-2 conv tile as ONE fused-K matmul (K = 9*Cin) + BN + ReLU.

    x_ref     : (1, TM, 9*Cin) bf16   channel-stacked stride-2 tap slab
    w_ref     : (9*Cin, Cout)  bf16   tap-major weights, BN scale folded in
    shift_ref : (1, Cout)      f32    folded BatchNorm shift (incl. conv bias)
    o_ref     : (1, TM, Cout)
    """
    acc = jnp.dot(x_ref[0], w_ref[...], preferred_element_type=jnp.float32)
    o_ref[0] = jnp.maximum(acc + shift_ref[...], 0.0).astype(o_ref.dtype)


def conv2_pool_kernel(x_ref, w_ref, shift_ref, p_ref, o_ref):
    """Fused conv2 (single K=9*C1 matmul) + BN + ReLU + AdaptiveAvgPool2d(8).

    Pooling is a matmul against a precomputed (64, M2) averaging matrix, which
    reproduces PyTorch AdaptiveAvgPool2d semantics for any (ho2, wo2) and keeps
    the zero-padded M2 rows out of the average.

    x_ref : (1, M2p, 9*C1) bf16 ; w_ref : (9*C1, C2) bf16 ; shift : (1, C2) f32
    p_ref : (64, M2p) f32       ; o_ref : (1, 64, C2) f32
    """
    y = jnp.dot(x_ref[0], w_ref[...], preferred_element_type=jnp.float32)
    y = jnp.maximum(y + shift_ref[...], 0.0)
    o_ref[0] = jnp.dot(p_ref[...], y, preferred_element_type=jnp.float32)


# ---------------------------------------------------------------------------
# pallas_call wrappers
# ---------------------------------------------------------------------------
def _conv1(taps, w, shift, out_dtype, tm):
    B, Mp, K = taps.shape
    cout = w.shape[1]
    grid = (B, Mp // tm)
    return pl.pallas_call(
        conv_bn_relu_kernel,
        grid=grid,
        out_shape=jax.ShapeDtypeStruct((B, Mp, cout), out_dtype),
        in_specs=[
            pl.BlockSpec((1, tm, K), lambda b, m: (b, m, 0)),
            pl.BlockSpec((K, cout), lambda b, m: (0, 0)),
            pl.BlockSpec((1, cout), lambda b, m: (0, 0)),
        ],
        out_specs=pl.BlockSpec((1, tm, cout), lambda b, m: (b, m, 0)),
        compiler_params=pltpu.CompilerParams(
            dimension_semantics=("parallel", "parallel"),
            vmem_limit_bytes=VMEM_LIMIT,
        ),
    )(taps, w, shift)


def _conv2_pool(taps, w, shift, pmat):
    B, M2p, K = taps.shape
    cout = w.shape[1]
    return pl.pallas_call(
        conv2_pool_kernel,
        grid=(B,),
        out_shape=jax.ShapeDtypeStruct((B, POOL * POOL, cout), jnp.float32),
        in_specs=[
            pl.BlockSpec((1, M2p, K), lambda b: (b, 0, 0)),
            pl.BlockSpec((K, cout), lambda b: (0, 0)),
            pl.BlockSpec((1, cout), lambda b: (0, 0)),
            pl.BlockSpec((POOL * POOL, M2p), lambda b: (0, 0)),
        ],
        out_specs=pl.BlockSpec((1, POOL * POOL, cout), lambda b: (b, 0, 0)),
        compiler_params=pltpu.CompilerParams(
            dimension_semantics=("parallel",),
            vmem_limit_bytes=VMEM_LIMIT,
        ),
    )(taps, w, shift, pmat)


# ---------------------------------------------------------------------------
# Host-side data / parameter re-layout (tiny; fused by XLA under jit)
# ---------------------------------------------------------------------------
def _build_tap_slabs(x_nhwc, m_pad, dtype=jnp.bfloat16):
    """NHWC -> (B, m_pad, 9*C) channel-stacked stride-2 tap slabs (3x3/s2/p1)."""
    B, H, W, C = x_nhwc.shape
    Ho, Wo = (H + 1) // 2, (W + 1) // 2
    xp = jnp.pad(x_nhwc, ((0, 0), (1, 1), (1, 1), (0, 0)))
    taps = [xp[:, ki:ki + 2 * Ho:2, kj:kj + 2 * Wo:2, :]
            for ki in range(3) for kj in range(3)]
    t = jnp.concatenate(taps, axis=-1).reshape(B, Ho * Wo, 9 * C)
    if m_pad > Ho * Wo:
        t = jnp.pad(t, ((0, 0), (0, m_pad - Ho * Wo), (0, 0)))
    return t.astype(dtype), Ho, Wo


def _prep_conv(conv_w, conv_b, gamma, beta, mean, var):
    """PyTorch (Cout, Cin, 3, 3) conv + BN(eval) -> (9*Cin, Cout) bf16 weights
    with BN scale folded in, plus a (1, Cout) f32 shift."""
    cout, cin = conv_w.shape[:2]
    scale = gamma * jax.lax.rsqrt(var + BN_EPS)
    shift = beta + (conv_b - mean) * scale
    w = conv_w.transpose(2, 3, 1, 0).reshape(9 * cin, cout)   # (ki,kj,cin) major
    w = w * scale[None, :]                                     # fold BN scale
    return w.astype(jnp.bfloat16), shift.reshape(1, cout).astype(jnp.float32)


def _adaptive_pool_matrix(ho, wo, out, m_pad):
    """(out*out, m_pad) averaging matrix reproducing AdaptiveAvgPool2d(out)."""
    P = np.zeros((out * out, m_pad), np.float32)
    for p in range(out):
        h0, h1 = (p * ho) // out, -((-(p + 1) * ho) // out)
        for q in range(out):
            w0, w1 = (q * wo) // out, -((-(q + 1) * wo) // out)
            val = 1.0 / ((h1 - h0) * (w1 - w0))
            for i in range(h0, h1):
                for j in range(w0, w1):
                    P[p * out + q, i * wo + j] = val
    return jnp.asarray(P)


# ---------------------------------------------------------------------------
# Forward pass (from the FPN-neck output onwards)
# ---------------------------------------------------------------------------
def regress_flow_b_v2_forward(neck_feat, params, num_joints):
    B, C0, H, W = neck_feat.shape
    c1, c2 = C0 // 2, C0 // 8

    # parameter folding / re-layout
    w1, t1 = _prep_conv(params["conv1_w"], params["conv1_b"], params["bn1_g"],
                        params["bn1_b"], params["bn1_m"], params["bn1_v"])
    w2, t2 = _prep_conv(params["conv2_w"], params["conv2_b"], params["bn2_g"],
                        params["bn2_b"], params["bn2_m"], params["bn2_v"])

    # --- neck_out block 1: conv3x3/s2 + BN + ReLU (single K=9*C0 matmul) ---
    x = jnp.transpose(neck_feat, (0, 2, 3, 1))           # NCHW -> NHWC (boundary)
    ho1, wo1 = (H + 1) // 2, (W + 1) // 2
    tm1, m1_pad = _choose_tiling(ho1 * wo1)
    taps1, _, _ = _build_tap_slabs(x, m1_pad)             # (B, m1_pad, 9*C0) bf16
    y1 = _conv1(taps1, w1, t1, jnp.bfloat16, tm1)         # (B, m1_pad, c1) bf16

    # --- neck_out block 2 + AdaptiveAvgPool2d(8): one fused pallas_call ---
    y1 = y1[:, :ho1 * wo1].reshape(B, ho1, wo1, c1)
    ho2, wo2 = (ho1 + 1) // 2, (wo1 + 1) // 2
    m2_pad = _round_up(ho2 * wo2, 8)
    taps2, _, _ = _build_tap_slabs(y1, m2_pad)            # (B, m2_pad, 9*c1) bf16
    pmat = _adaptive_pool_matrix(ho2, wo2, POOL, m2_pad)
    pooled = _conv2_pool(taps2, w2, t2, pmat)             # (B, 64, c2) f32

    # --- flatten (PyTorch NCHW order) + fc_coord / fc_sigma heads (plain XLA;
    # a (B,512)x(512,2K) matmul is launch-overhead-bound as a pallas_call) ---
    feat = jnp.transpose(pooled, (0, 2, 1)).reshape(B, c2 * POOL * POOL)
    y_c = feat @ params["wc"].T
    x_norm = jnp.sqrt(jnp.sum(feat * feat, axis=1, keepdims=True))  # torch.norm (no eps)
    y_c = y_c / x_norm + params["bc"]
    y_s = jax.nn.sigmoid(feat @ params["ws"].T + params["bs"])

    pred_jts = y_c.reshape(B, num_joints, 2)
    sigma = y_s.reshape(B, num_joints, 2)
    scores = jnp.mean(1.0 - sigma, axis=2, keepdims=True)
    return {
        "pred_jts": pred_jts,
        "sigma": sigma,
        "maxvals": scores.astype(jnp.float32),
        "nf_loss": None,  # eval-mode / labels=None branch (RealNVP unused)
    }


# ---------------------------------------------------------------------------
# Deterministic parameter construction + demo run
# ---------------------------------------------------------------------------
def make_params(key, c0, num_joints, feat_dim):
    c_mid, c_out = c0 // 2, c0 // 8
    ks = jax.random.split(key, 12)
    p = {
        "conv1_w": 0.05 * jax.random.normal(ks[0], (c_mid, c0, 3, 3), jnp.float32),
        "conv1_b": 0.05 * jax.random.normal(ks[1], (c_mid,), jnp.float32),
        "bn1_g": 1.0 + 0.1 * jax.random.normal(ks[2], (c_mid,), jnp.float32),
        "bn1_b": 0.05 * jax.random.normal(ks[3], (c_mid,), jnp.float32),
        "bn1_m": 0.05 * jax.random.normal(ks[4], (c_mid,), jnp.float32),
        "bn1_v": 0.5 + jax.random.uniform(ks[5], (c_mid,), jnp.float32),
        "conv2_w": 0.05 * jax.random.normal(ks[6], (c_out, c_mid, 3, 3), jnp.float32),
        "conv2_b": 0.05 * jax.random.normal(ks[7], (c_out,), jnp.float32),
        "bn2_g": 1.0 + 0.1 * jax.random.normal(ks[8], (c_out,), jnp.float32),
        "bn2_b": 0.05 * jax.random.normal(ks[9], (c_out,), jnp.float32),
        "bn2_m": 0.05 * jax.random.normal(ks[10], (c_out,), jnp.float32),
        "bn2_v": 0.5 + jax.random.uniform(ks[11], (c_out,), jnp.float32),
    }
    k2 = jax.random.split(jax.random.fold_in(key, 123), 4)
    p["wc"] = 0.01 * jax.random.normal(k2[0], (num_joints * 2, feat_dim), jnp.float32)
    p["bc"] = jnp.zeros((num_joints * 2,), jnp.float32)
    p["ws"] = 0.01 * jax.random.normal(k2[1], (num_joints * 2, feat_dim), jnp.float32)
    p["bs"] = jnp.zeros((num_joints * 2,), jnp.float32)
    return p


if __name__ == "__main__":
    key = jax.random.PRNGKey(0)
    B = 2
    NUM_JOINTS = 17
    C0 = 64            # decoder_feature_channel[0] for resnet18/34
    H = W = 32         # FPN-neck output spatial size (small demo shape)
    FEAT_DIM = (C0 // 8) * POOL * POOL   # 512 after neck_out + AdaptiveAvgPool2d(8)

    k_in, k_par = jax.random.split(key)
    neck_feat = jax.random.normal(k_in, (B, C0, H, W), jnp.float32)
    params = make_params(k_par, C0, NUM_JOINTS, FEAT_DIM)

    fwd = functools.partial(regress_flow_b_v2_forward, num_joints=NUM_JOINTS)
    out = jax.jit(fwd)(neck_feat, params)
    jax.block_until_ready(out["pred_jts"])
    jax.block_until_ready(out["sigma"])
    jax.block_until_ready(out["maxvals"])

    assert out["pred_jts"].shape == (B, NUM_JOINTS, 2)
    assert out["sigma"].shape == (B, NUM_JOINTS, 2)
    assert out["maxvals"].shape == (B, NUM_JOINTS, 1)
    assert out["nf_loss"] is None
    assert bool(jnp.all(jnp.isfinite(out["pred_jts"])))
    assert bool(jnp.all(jnp.isfinite(out["sigma"])))
    print("KERNEL_OK")
</pallas_src>

<mosaic_0001>
module attributes {stable_mosaic.version = 11 : i64} {
  func.func @conv_bn_relu_kernel(%arg0: i32, %arg1: i32, %arg2: memref<1x128x576xbf16, #tpu.memory_space<vmem>>, %arg3: memref<576x32xbf16, #tpu.memory_space<vmem>>, %arg4: memref<1x32xf32, #tpu.memory_space<vmem>>, %arg5: memref<1x128x32xbf16, #tpu.memory_space<vmem>>) attributes {dimension_semantics = [#tpu.dimension_semantics<parallel>, #tpu.dimension_semantics<parallel>], iteration_bounds = array<i64: 2, 2>, scalar_prefetch = 0 : i64, scratch_operands = 0 : i64, tpu.core_type = #tpu.core_type<tc>, window_params = [{transform_indices = @transform_0, window_bounds = array<i64: 1, 128, 576>}, {pipeline_mode = #tpu.pipeline_mode<synchronous>, transform_indices = @transform_1, window_bounds = array<i64: 576, 32>}, {pipeline_mode = #tpu.pipeline_mode<synchronous>, transform_indices = @transform_2, window_bounds = array<i64: 1, 32>}, {transform_indices = @transform_3, window_bounds = array<i64: 1, 128, 32>}]} {
    %c0 = arith.constant 0 : index
    %c0_0 = arith.constant 0 : index
    %c0_1 = arith.constant 0 : index
    %0 = vector.load %arg2[%c0, %c0_0, %c0_1] : memref<1x128x576xbf16, #tpu.memory_space<vmem>>, vector<1x128x576xbf16>
    %1 = vector.shape_cast %0 : vector<1x128x576xbf16> to vector<128x576xbf16>
    %c0_2 = arith.constant 0 : index
    %c0_3 = arith.constant 0 : index
    %2 = vector.load %arg3[%c0_2, %c0_3] : memref<576x32xbf16, #tpu.memory_space<vmem>>, vector<576x32xbf16>
    %cst = arith.constant dense<0.000000e+00> : vector<128x32xf32>
    %3 = tpu.matmul %1, %2, %cst {dimension_numbers = #tpu.dot_dimension_numbers<[1], [0], [0], [1], [0, 0, 1, 1], [], []>} : vector<128x576xbf16>, vector<576x32xbf16>, vector<128x32xf32> -> vector<128x32xf32>
    %c0_4 = arith.constant 0 : index
    %c0_5 = arith.constant 0 : index
    %4 = vector.load %arg4[%c0_4, %c0_5] : memref<1x32xf32, #tpu.memory_space<vmem>>, vector<1x32xf32>
    %5 = vector.broadcast %4 : vector<1x32xf32> to vector<128x32xf32>
    %6 = arith.addf %3, %5 : vector<128x32xf32>
    %cst_6 = arith.constant 0.000000e+00 : f32
    %7 = vector.broadcast %cst_6 : f32 to vector<128x32xf32>
    %8 = arith.maximumf %6, %7 : vector<128x32xf32>
    %9 = arith.truncf %8 : vector<128x32xf32> to vector<128x32xbf16>
    %c0_7 = arith.constant 0 : index
    %c0_8 = arith.constant 0 : index
    %c0_9 = arith.constant 0 : index
    %10 = vector.load %arg5[%c0_7, %c0_8, %c0_9] : memref<1x128x32xbf16, #tpu.memory_space<vmem>>, vector<1x128x32xbf16>
    %11 = vector.shape_cast %10 : vector<1x128x32xbf16> to vector<128x32xbf16>
    %12 = vector.shape_cast %9 : vector<128x32xbf16> to vector<1x128x32xbf16>
    tpu.vector_store %arg5[%c0_7, %c0_8, %c0_9], %12 {strides = array<i32>} : memref<1x128x32xbf16, #tpu.memory_space<vmem>>, vector<1x128x32xbf16>,
    return
  }
  func.func @transform_0(%arg0: i32, %arg1: i32) -> (i32, i32, i32) {
    %c0_i32 = arith.constant 0 : i32
    %c0_i32_0 = arith.constant 0 : i32
    return %arg0, %arg1, %c0_i32 : i32, i32, i32
  }
  func.func @transform_1(%arg0: i32, %arg1: i32) -> (i32, i32) {
    %c0_i32 = arith.constant 0 : i32
    %c0_i32_0 = arith.constant 0 : i32
    %c0_i32_1 = arith.constant 0 : i32
    return %c0_i32, %c0_i32_0 : i32, i32
  }
  func.func @transform_2(%arg0: i32, %arg1: i32) -> (i32, i32) {
    %c0_i32 = arith.constant 0 : i32
    %c0_i32_0 = arith.constant 0 : i32
    %c0_i32_1 = arith.constant 0 : i32
    return %c0_i32, %c0_i32_0 : i32, i32
  }
  func.func @transform_3(%arg0: i32, %arg1: i32) -> (i32, i32, i32) {
    %c0_i32 = arith.constant 0 : i32
    %c0_i32_0 = arith.constant 0 : i32
    return %arg0, %arg1, %c0_i32 : i32, i32, i32
  }
}

module attributes {stable_mosaic.version = 11 : i64} {
  func.func @conv2_pool_kernel(%arg0: i32, %arg1: memref<1x64x288xbf16, #tpu.memory_space<vmem>>, %arg2: memref<288x8xbf16, #tpu.memory_space<vmem>>, %arg3: memref<1x8xf32, #tpu.memory_space<vmem>>, %arg4: memref<64x64xf32, #tpu.memory_space<vmem>>, %arg5: memref<1x64x8xf32, #tpu.memory_space<vmem>>) attributes {dimension_semantics = [#tpu.dimension_semantics<parallel>], iteration_bounds = array<i64: 2>, scalar_prefetch = 0 : i64, scratch_operands = 0 : i64, tpu.core_type = #tpu.core_type<tc>, window_params = [{transform_indices = @transform_0, window_bounds = array<i64: 1, 64, 288>}, {pipeline_mode = #tpu.pipeline_mode<synchronous>, transform_indices = @transform_1, window_bounds = array<i64: 288, 8>}, {pipeline_mode = #tpu.pipeline_mode<synchronous>, transform_indices = @transform_2, window_bounds = array<i64: 1, 8>}, {pipeline_mode = #tpu.pipeline_mode<synchronous>, transform_indices = @transform_3, window_bounds = array<i64: 64, 64>}, {transform_indices = @transform_4, window_bounds = array<i64: 1, 64, 8>}]} {
    %c0 = arith.constant 0 : index
    %c0_0 = arith.constant 0 : index
    %c0_1 = arith.constant 0 : index
    %0 = vector.load %arg1[%c0, %c0_0, %c0_1] : memref<1x64x288xbf16, #tpu.memory_space<vmem>>, vector<1x64x288xbf16>
    %1 = vector.shape_cast %0 : vector<1x64x288xbf16> to vector<64x288xbf16>
    %c0_2 = arith.constant 0 : index
    %c0_3 = arith.constant 0 : index
    %2 = vector.load %arg2[%c0_2, %c0_3] : memref<288x8xbf16, #tpu.memory_space<vmem>>, vector<288x8xbf16>
    %cst = arith.constant dense<0.000000e+00> : vector<64x8xf32>
    %3 = tpu.matmul %1, %2, %cst {dimension_numbers = #tpu.dot_dimension_numbers<[1], [0], [0], [1], [0, 0, 1, 1], [], []>} : vector<64x288xbf16>, vector<288x8xbf16>, vector<64x8xf32> -> vector<64x8xf32>
    %c0_4 = arith.constant 0 : index
    %c0_5 = arith.constant 0 : index
    %4 = vector.load %arg3[%c0_4, %c0_5] : memref<1x8xf32, #tpu.memory_space<vmem>>, vector<1x8xf32>
    %5 = vector.broadcast %4 : vector<1x8xf32> to vector<64x8xf32>
    %6 = arith.addf %3, %5 : vector<64x8xf32>
    %cst_6 = arith.constant 0.000000e+00 : f32
    %7 = vector.broadcast %cst_6 : f32 to vector<64x8xf32>
    %8 = arith.maximumf %6, %7 : vector<64x8xf32>
    %c0_7 = arith.constant 0 : index
    %c0_8 = arith.constant 0 : index
    %9 = vector.load %arg4[%c0_7, %c0_8] : memref<64x64xf32, #tpu.memory_space<vmem>>, vector<64x64xf32>
    %cst_9 = arith.constant dense<0.000000e+00> : vector<64x8xf32>
    %10 = tpu.matmul %9, %8, %cst_9 {dimension_numbers = #tpu.dot_dimension_numbers<[1], [0], [0], [1], [0, 0, 1, 1], [], []>} : vector<64x64xf32>, vector<64x8xf32>, vector<64x8xf32> -> vector<64x8xf32>
    %c0_10 = arith.constant 0 : index
    %c0_11 = arith.constant 0 : index
    %c0_12 = arith.constant 0 : index
    %11 = vector.load %arg5[%c0_10, %c0_11, %c0_12] : memref<1x64x8xf32, #tpu.memory_space<vmem>>, vector<1x64x8xf32>
    %12 = vector.shape_cast %11 : vector<1x64x8xf32> to vector<64x8xf32>
    %13 = vector.shape_cast %10 : vector<64x8xf32> to vector<1x64x8xf32>
    tpu.vector_store %arg5[%c0_10, %c0_11, %c0_12], %13 {strides = array<i32>} : memref<1x64x8xf32, #tpu.memory_space<vmem>>, vector<1x64x8xf32>,
    return
  }
  func.func @transform_0(%arg0: i32) -> (i32, i32, i32) {
    %c0_i32 = arith.constant 0 : i32
    %c0_i32_0 = arith.constant 0 : i32
    %c0_i32_1 = arith.constant 0 : i32
    return %arg0, %c0_i32, %c0_i32_0 : i32, i32, i32
  }
  func.func @transform_1(%arg0: i32) -> (i32, i32) {
    %c0_i32 = arith.constant 0 : i32
    %c0_i32_0 = arith.constant 0 : i32
    %c0_i32_1 = arith.constant 0 : i32
    return %c0_i32, %c0_i32_0 : i32, i32
  }
  func.func @transform_2(%arg0: i32) -> (i32, i32) {
    %c0_i32 = arith.constant 0 : i32
    %c0_i32_0 = arith.constant 0 : i32
    %c0_i32_1 = arith.constant 0 : i32
    return %c0_i32, %c0_i32_0 : i32, i32
  }
  func.func @transform_3(%arg0: i32) -> (i32, i32) {
    %c0_i32 = arith.constant 0 : i32
    %c0_i32_0 = arith.constant 0 : i32
    %c0_i32_1 = arith.constant 0 : i32
    return %c0_i32, %c0_i32_0 : i32, i32
  }
  func.func @transform_4(%arg0: i32) -> (i32, i32, i32) {
    %c0_i32 = arith.constant 0 : i32
    %c0_i32_0 = arith.constant 0 : i32
    %c0_i32_1 = arith.constant 0 : i32
    return %arg0, %c0_i32, %c0_i32_0 : i32, i32, i32
  }
}

</mosaic_0001>

<bundles_post_ra>
// kernel: regress_flow_b_v2_forward.2
= control target key start
LH: loop header
LB: loop body
LE: loop exit
PB: predicated region body
PF: predicated region fallthrough
CT: control target
= control target key end

     0   :  { %s1758_s12 = smov 0   ;;  %s1760_s13 = smov 0   ;;  %s2073_s0 = inlined_call_operand.vmem [shape: bf16[2,256,576], index: 0, kind: input, shape index: {}]   ;;  %s2074_s1 = inlined_call_operand.vmem [shape: bf16[576,32], index: 1, kind: input, shape index: {}]   ;;  %s2075_s2 = inlined_call_operand.vmem [shape: f32[1,32], index: 2, kind: input, shape index: {}]   ;;  %s2076_s3 = inlined_call_operand.vmem [shape: bf16[2,256,32], index: 3, kind: output, shape index: {}]  }
   0x1   :  { %s1762_s14 = smov 0   ;;  %s1764_s15 = smov 0  }
   0x2   :  { %s1766_s16 = smov 0  }
   0x3 LB: > { %s22_s17 = sadd.s32 1, %s1728_s14  ;;  %s25_s18 = sadd.s32 1, %s1732_s15  ;;  %s1736_s16 = sphi %s1766_s16, %s13_s16   ;;  %s1732_s15 = sphi %s1764_s15, %s2080_s15   ;;  %s1728_s14 = sphi %s1762_s14, %s2079_s14   ;;  %s1724_s13 = sphi %s1760_s13, %s2078_s13   ;;  %s1720_s12 = sphi %s1758_s12, %s2077_s12  }
   0x4   : > { %p23_p0 = scmp.ge.s32.totalorder %s22_s17, 2  ;;  %p1267_p1 = scmp.ge.s32.totalorder %s1736_s16, 1 }
   0x5   : > { %p159_p2 = scmp.lt.s32.totalorder %s1736_s16, 5 }
   0x6   : > { %s2082_s17 = smov (%p23_p0, %s22_s17), 0  ;;  %s2084_s18 = smov (!%p23_p0, %s25_s18), %s1732_s15 }
   0x7   : > { %p160_p3 = pnand %p1267_p1, %p159_p2  ;;  %p27_p4 = scmp.ge.s32.totalorder %s2084_s18, 2 }
   0x8   : > { %v1606_v0 = vld [vmem:[%s2074_s1 + $0x40] sm:$0xff] (!%p160_p3)   ;;  %v1610_v4 = vld [vmem:[%s2074_s1 + $0x48] sm:$0xff] (!%p160_p3)   ;;  %v1614_v8 = vld [vmem:[%s2074_s1 + $0x50] sm:$0xff] (!%p160_p3)   ;;  %s1268_s10 = sshll.u32 (!%p160_p3), %s1720_s12, 4  ;;  %p193_p5 = scmp.lt.s32.totalorder (!%p160_p3), %s1724_s13, 1  ;;  %vm757_vm0 = vcmask (!%p160_p3), 523264  }
   0x9   : > { %s2086_s18 = smov (%p27_p4, %s2084_s18), 0  ;;  %163 = sbr.rel (%p160_p3) target bundleno = 338 (0x152), region = 32 }
   0xa   : > { %v1607_v1 = vld [vmem:[%s2074_s1 + $0xc0] sm:$0xff] (!%p160_p3)   ;;  %1392 = vmatprep.subr.bf16.mxu0 (!%p160_p3), %v1606_v0  ;;  %v1611_v5 = vld [vmem:[%s2074_s1 + $0xc8] sm:$0xff] (!%p160_p3)   ;;  %v1615_v9 = vld [vmem:[%s2074_s1 + $0xd0] sm:$0xff] (!%p160_p3)   ;;  %p195_p6 = scmp.lt.s32.totalorder (!%p160_p3), %s1268_s10, 31  ;;  %vm1153_vm1 = vcmask (!%p160_p3), 257024  }
   0xb   : > { %v1608_v2 = vld [vmem:[%s2074_s1] sm:$0xff] (!%p160_p3)   ;;  %1456 = vmatprep.subr.bf16.mxu1 (!%p160_p3), %v1607_v1  ;;  %v1612_v6 = vld [vmem:[%s2074_s1 + $0x8] sm:$0xff] (!%p160_p3)   ;;  %v1616_v10 = vld [vmem:[%s2074_s1 + $0x10] sm:$0xff] (!%p160_p3)  }
   0xc   : > { %v1609_v3 = vld [vmem:[%s2074_s1 + $0x80] sm:$0xff] (!%p160_p3)   ;;  %1393 = vmatpush3.bf16.msra.mxu0 (!%p160_p3), %v1608_v2  ;;  %v1613_v7 = vld [vmem:[%s2074_s1 + $0x88] sm:$0xff] (!%p160_p3)   ;;  %v1617_v11 = vld [vmem:[%s2074_s1 + $0x90] sm:$0xff] (!%p160_p3)  }
   0xd   : > { %1457 = vmatpush3.bf16.msra.mxu1 (!%p160_p3), %v1609_v3  ;;  %1394 = vmatprep.subr.bf16.mxu0 (!%p160_p3), %v1610_v4  ;;  %v1618_v12 = vld [vmem:[%s2074_s1 + $0x58] sm:$0xff] (!%p160_p3)   ;;  %v1622_v16 = vld [vmem:[%s2074_s1 + $0x60] sm:$0xff] (!%p160_p3)   ;;  %v1626_v20 = vld [vmem:[%s2074_s1 + $0x68] sm:$0xff] (!%p160_p3)  }
   0xe   : > { %1458 = vmatprep.subr.bf16.mxu1 (!%p160_p3), %v1611_v5  ;;  %v1619_v13 = vld [vmem:[%s2074_s1 + $0xd8] sm:$0xff] (!%p160_p3)   ;;  %v1623_v17 = vld [vmem:[%s2074_s1 + $0xe0] sm:$0xff] (!%p160_p3)   ;;  %v1627_v21 = vld [vmem:[%s2074_s1 + $0xe8] sm:$0xff] (!%p160_p3)  }
   0xf   : > { %v1620_v14 = vld [vmem:[%s2074_s1 + $0x18] sm:$0xff] (!%p160_p3)   ;;  %v1624_v18 = vld [vmem:[%s2074_s1 + $0x20] sm:$0xff] (!%p160_p3)   ;;  %v1628_v22 = vld [vmem:[%s2074_s1 + $0x28] sm:$0xff] (!%p160_p3)  }
  0x10   : > { %1395 = vmatpush3.bf16.msra.mxu0 %v1612_v6  ;;  %s2088_s13 = smov (!%p193_p5, %s1724_s13), 1  ;;  %v1621_v15 = vld [vmem:[%s2074_s1 + $0x98] sm:$0xff]   ;;  %s2090_s10 = smov (!%p195_p6, %s1268_s10), 31  ;;  %v1625_v19 = vld [vmem:[%s2074_s1 + $0xa0] sm:$0xff]   ;;  %v1629_v23 = vld [vmem:[%s2074_s1 + $0xa8] sm:$0xff]  }
  0x11   : > { %1459 = vmatpush3.bf16.msra.mxu1 %v1613_v7  ;;  %1396 = vmatprep.subr.bf16.mxu0 %v1614_v8  ;;  %s1565_s11 = smul.u32 160, %s2088_s13  ;;  %v1630_v24 = vld [vmem:[%s2074_s1 + $0x70] sm:$0xff]   ;;  %v1634_v28 = vld [vmem:[%s2074_s1 + $0x78] sm:$0xff]   ;;  %v1644_v36 = vld [vmem:[%s2074_s1 + $0x100] sm:$0xff]  }
  0x12   : > { %1460 = vmatprep.subr.bf16.mxu1 %v1615_v9  ;;  %s1564_s21 = smul.u32 5, %s2090_s10  ;;  %v1631_v25 = vld [vmem:[%s2074_s1 + $0xf0] sm:$0xff]   ;;  %v1635_v29 = vld [vmem:[%s2074_s1 + $0xf8] sm:$0xff]   ;;  %v1657_v42 = vld [vmem:[%s2074_s1 + $0x108] sm:$0xff]  }
  0x13   : > { %v1632_v26 = vld [vmem:[%s2074_s1 + $0x30] sm:$0xff]   ;;  %v1636_v30 = vld [vmem:[%s2074_s1 + $0x38] sm:$0xff]  }
  0x14   : > { %1397 = vmatpush3.bf16.msra.mxu0 %v1616_v10  ;;  %s199_s29 = sadd.s32 %s1565_s11, %s1564_s21  ;;  %v1633_v27 = vld [vmem:[%s2074_s1 + $0xb0] sm:$0xff]   ;;  %v1637_v31 = vld [vmem:[%s2074_s1 + $0xb8] sm:$0xff]   ;;  %s1271_s21 = sshll.u32 %s2088_s13, 5 }
  0x15   : > { %1461 = vmatpush3.bf16.msra.mxu1 %v1617_v11  ;;  %1398 = vmatprep.subr.bf16.mxu0 %v1618_v12  ;;  %s1269_s9 = sshll.u32 %s199_s29, 2  ;;  %v1670_v46 = vld [vmem:[%s2074_s1 + $0x110] sm:$0xff]   ;;  %v1683_v49 = vld [vmem:[%s2074_s1 + $0x118] sm:$0xff]   ;;  %s209_s22 = sadd.s32 %s1271_s21, %s2090_s10 }
  0x16   : > { %1462 = vmatprep.subr.bf16.mxu1 %v1619_v13  ;;  %s1894_s25 = scalar_lea.vmem %s2073_s0, %s1269_s9  ;;  %s1272_s23 = sshll.u32 %s209_s22, 2 }
  0x17   : > { %v1638_v32 = vld [vmem:[%s1894_s25] ss:$20 sps:$4 sm:$0xff]   ;;  %v1640_v33 = vld [vmem:[%s1894_s25 + $0x4] ss:$20 sps:$4 sm:$0xff]   ;;  %v1641_v34 = vld [vmem:[%s1894_s25 + $0x8] ss:$20 sps:$4 sm:$0xff]   ;;  %s2016_s24 = scalar_lea.vmem %s2076_s3, %s1272_s23 }
  0x18   : > { %1399 = vmatpush3.bf16.msra.mxu0 %v1620_v14  ;;  %v1643_v35 = vld [vmem:[%s1894_s25 + $0xc] ss:$20 sps:$4 sm:$0xff]   ;;  %814 = vmatprep.mubr.bf16.mxu0 %v1640_v33  ;;  %v1647_v38 = vld [vmem:[%s1894_s25 + $0x34] ss:$20 sps:$4 sm:$0xff]   ;;  %v1650_v40 = vld [vmem:[%s1894_s25 + $0x30] ss:$20 sps:$4 sm:$0xff]  }
  0x19   : > { %1463 = vmatpush3.bf16.msra.mxu1 %v1621_v15  ;;  %1400 = vmatprep.subr.bf16.mxu0 %v1622_v16  ;;  %v1645_v37 = vld [vmem:[%s1894_s25 + $0x2c] ss:$20 sps:$4 sm:$0xff]   ;;  %v1649_v39 = vld [vmem:[%s1894_s25 + $0x28] ss:$20 sps:$4 sm:$0xff]   ;;  %v1655_v44 = vld [vmem:[%s1894_s25 + $0x50] ss:$20 sps:$4 sm:$0xff]  }
  0x1a   : > { %1464 = vmatprep.subr.bf16.mxu1 %v1623_v17  ;;  %911 = vmatprep.mubr.bf16.mxu1 %v1643_v35  ;;  %v1651_v41 = vld [vmem:[%s1894_s25 + $0x54] ss:$20 sps:$4 sm:$0xff]   ;;  %v1653_v43 = vld [vmem:[%s1894_s25 + $0x5c] ss:$20 sps:$4 sm:$0xff]   ;;  %v1656_v45 = vld [vmem:[%s1894_s25 + $0x58] ss:$20 sps:$4 sm:$0xff]  }
  0x1b   : > { %v1658_v47 = vld [vmem:[%s1894_s25 + $0x7c] ss:$20 sps:$4 sm:$0xff]   ;;  %v1660_v48 = vld [vmem:[%s1894_s25 + $0x84] ss:$20 sps:$4 sm:$0xff]   ;;  %v1663_v51 = vld [vmem:[%s1894_s25 + $0x80] ss:$20 sps:$4 sm:$0xff]  }
  0x1c   : > { %1401 = vmatpush3.bf16.msra.mxu0 %v1624_v18  ;;  %v1662_v50 = vld [vmem:[%s1894_s25 + $0x78] ss:$20 sps:$4 sm:$0xff]   ;;  %v1668_v54 = vld [vmem:[%s1894_s25 + $0xa0] ss:$20 sps:$4 sm:$0xff]   ;;  %v1669_v55 = vld [vmem:[%s1894_s25 + $0xa8] ss:$20 sps:$4 sm:$0xff]  }
  0x1d   : > { %1465 = vmatpush3.bf16.msra.mxu1 %v1625_v19  ;;  %1402 = vmatprep.subr.bf16.mxu0 %v1626_v20  ;;  %v1664_v52 = vld [vmem:[%s1894_s25 + $0xa4] ss:$20 sps:$4 sm:$0xff]   ;;  %v1666_v53 = vld [vmem:[%s1894_s25 + $0xac] ss:$20 sps:$4 sm:$0xff]   ;;  %v1673_v57 = vld [vmem:[%s1894_s25 + $0xd4] ss:$20 sps:$4 sm:$0xff]  }
  0x1e   : > { %1466 = vmatprep.subr.bf16.mxu1 %v1627_v21  ;;  %v1671_v56 = vld [vmem:[%s1894_s25 + $0xcc] ss:$20 sps:$4 sm:$0xff]   ;;  %v1675_v58 = vld [vmem:[%s1894_s25 + $0xc8] ss:$20 sps:$4 sm:$0xff]   ;;  %v1676_v59 = vld [vmem:[%s1894_s25 + $0xd0] ss:$20 sps:$4 sm:$0xff]  }
  0x1f   : > { %v1677_v60 = vld [vmem:[%s1894_s25 + $0xf4] ss:$20 sps:$4 sm:$0xff]   ;;  %v1679_v61 = vld [vmem:[%s1894_s25 + $0xfc] ss:$20 sps:$4 sm:$0xff]   ;;  %v1682_v63 = vld [vmem:[%s1894_s25 + $0xf8] ss:$20 sps:$4 sm:$0xff]  }
  0x20   : > { %1403 = vmatpush3.bf16.msra.mxu0 %v1628_v22  ;;  %v1681_v62 = vld [vmem:[%s1894_s25 + $0xf0] ss:$20 sps:$4 sm:$0xff]   ;;  %v1688_v2 = vld [vmem:[%s1894_s25 + $0x118] ss:$20 sps:$4 sm:$0xff]   ;;  %v1689_v3 = vld [vmem:[%s1894_s25 + $0x120] ss:$20 sps:$4 sm:$0xff]  }
  0x21   : > { %1467 = vmatpush3.bf16.msra.mxu1 %v1629_v23  ;;  %1404 = vmatprep.subr.bf16.mxu0 %v1630_v24  ;;  %v1684_v0 = vld [vmem:[%s1894_s25 + $0x11c] ss:$20 sps:$4 sm:$0xff]   ;;  %v1686_v1 = vld [vmem:[%s1894_s25 + $0x124] ss:$20 sps:$4 sm:$0xff]   ;;  %v1694_v8 = vld [vmem:[%s1894_s25 + $0x60] ss:$20 sps:$4 sm:$0xff]  }
  0x22   : > { %1468 = vmatprep.subr.bf16.mxu1 %v1631_v25  ;;  %v1690_v4 = vld [vmem:[%s1894_s25 + $0x10] ss:$20 sps:$4 sm:$0xff]   ;;  %v1692_v6 = vld [vmem:[%s1894_s25 + $0x38] ss:$20 sps:$4 sm:$0xff]   ;;  %v1695_v9 = vld [vmem:[%s1894_s25 + $0x100] ss:$20 sps:$4 sm:$0xff]  }
  0x23   : > { %v1691_v5 = vld [vmem:[%s1894_s25 + $0xb0] ss:$20 sps:$4 sm:$0xff]   ;;  %v1693_v7 = vld [vmem:[%s1894_s25 + $0xd8] ss:$20 sps:$4 sm:$0xff]   ;;  %v1696_v10 = vld [vmem:[%s1894_s25 + $0x88] ss:$20 sps:$4 sm:$0xff]  }
  0x24   : > { %1405 = vmatpush3.bf16.msra.mxu0 %v1632_v26  ;;  %v1697_v11 = vld [vmem:[%s1894_s25 + $0x128] ss:$20 sps:$4 sm:$0xff]   ;;  %v1965_v14 = vld [vmem:[%s2075_s2] ss:$0 sm:$0xff] }
  0x25   : > { %1469 = vmatpush3.bf16.msra.mxu1 %v1633_v27  ;;  %1406 = vmatprep.subr.bf16.mxu0 %v1634_v28 }
  0x26   : > { %1470 = vmatprep.subr.bf16.mxu1 %v1635_v29 }
  0x28   : > { %1407 = vmatpush3.bf16.msra.mxu0 %v1636_v30 }
  0x29   : > { %1471 = vmatpush3.bf16.msra.mxu1 %v1637_v31  ;;  %1532 = vmatprep.subr.bf16.mxu0 %v1644_v36 }
  0x2a   : > { %1556 = vmatprep.subr.bf16.mxu1 %v1644_v36 }
  0x2b   : > { %815 = vmatmul.mubr.bf16.vlgmr.msra.gmra.mrb[0].mxu0 %v1638_v32 }
  0x2c   : > { %912 = vmatmul.mubr.bf16.vlgmr.msra.gmra.mrb[0].mxu1 %v1641_v34  ;;  %1533 = vmatpush3.bf16.msra.mxu0 %v1644_v36 }
  0x2d   : > { %1560 = vmatpush3.bf16.msra.mxu1 %v1644_v36  ;;  %822 = vmatprep.mubr.bf16.mxu0 %v1645_v37 }
  0x2e   : > { %919 = vmatprep.mubr.bf16.mxu1 %v1647_v38  ;;  %1534 = vmatprep.subr.bf16.mxu0 %v1657_v42 }
  0x2f   : > { %1557 = vmatprep.subr.bf16.mxu1 %v1657_v42 }
  0x30   : > { %1535 = vmatpush3.bf16.msra.mxu0 %v1657_v42 }
  0x31   : > { %1561 = vmatpush3.bf16.msra.mxu1 %v1657_v42  ;;  %1536 = vmatprep.subr.bf16.mxu0 %v1670_v46 }
  0x32   : > { %1558 = vmatprep.subr.bf16.mxu1 %v1670_v46 }
  0x33   : > { %823 = vmatmul.mubr.bf16.gmra.mrb[4].mxu0 %v1649_v39 }
  0x34   : > { %920 = vmatmul.mubr.bf16.gmra.mrb[4].mxu1 %v1650_v40  ;;  %830 = vmatprep.mubr.bf16.mxu0 %v1651_v41 }
  0x35   : > { %927 = vmatprep.mubr.bf16.mxu1 %v1653_v43  ;;  %1537 = vmatpush3.bf16.msra.mxu0 %v1670_v46 }
  0x36   : > { %1562 = vmatpush3.bf16.msra.mxu1 %v1670_v46  ;;  %1538 = vmatprep.subr.bf16.mxu0 %v1683_v49 }
  0x37   : > { %1559 = vmatprep.subr.bf16.mxu1 %v1683_v49 }
  0x39   : > { %1539 = vmatpush3.bf16.msra.mxu0 %v1683_v49 }
  0x3a   : > { %1563 = vmatpush3.bf16.msra.mxu1 %v1683_v49 }
  0x3b   : > { %831 = vmatmul.mubr.bf16.gmra.mrb[8].mxu0 %v1655_v44 }
  0x3c   : > { %928 = vmatmul.mubr.bf16.gmra.mrb[8].mxu1 %v1656_v45  ;;  %838 = vmatprep.mubr.bf16.mxu0 %v1658_v47 }
  0x3d   : > { %935 = vmatprep.mubr.bf16.mxu1 %v1660_v48 }
  0x43   : > { %839 = vmatmul.mubr.bf16.gmra.mrb[12].mxu0 %v1662_v50 }
  0x44   : > { %936 = vmatmul.mubr.bf16.gmra.mrb[12].mxu1 %v1663_v51  ;;  %846 = vmatprep.mubr.bf16.mxu0 %v1664_v52 }
  0x45   : > { %943 = vmatprep.mubr.bf16.mxu1 %v1666_v53 }
  0x4b   : > { %847 = vmatmul.mubr.bf16.gmra.mrb[16].mxu0 %v1668_v54 }
  0x4c   : > { %944 = vmatmul.mubr.bf16.gmra.mrb[16].mxu1 %v1669_v55  ;;  %854 = vmatprep.mubr.bf16.mxu0 %v1671_v56 }
  0x4d   : > { %951 = vmatprep.mubr.bf16.mxu1 %v1673_v57 }
  0x53   : > { %855 = vmatmul.mubr.bf16.gmra.mrb[20].mxu0 %v1675_v58 }
  0x54   : > { %952 = vmatmul.mubr.bf16.gmra.mrb[20].mxu1 %v1676_v59  ;;  %862 = vmatprep.mubr.bf16.mxu0 %v1677_v60 }
  0x55   : > { %959 = vmatprep.mubr.bf16.mxu1 %v1679_v61 }
  0x5b   : > { %863 = vmatmul.mubr.bf16.gmra.mrb[24].mxu0 %v1681_v62 }
  0x5c   : > { %960 = vmatmul.mubr.bf16.gmra.mrb[24].mxu1 %v1682_v63  ;;  %870 = vmatprep.mubr.bf16.mxu0 %v1684_v0 }
  0x5d   : > { %967 = vmatprep.mubr.bf16.mxu1 %v1686_v1 }
  0x63   : > { %871 = vmatmul.mubr.bf16.gmra.mrb[28].mxu0 %v1688_v2 }
  0x64   : > { %968 = vmatmul.mubr.bf16.gmra.mrb[28].mxu1 %v1689_v3  ;;  %1540 = vmatprep.mubr.msk.bf16.mxu0 %vm757_vm0, %v1690_v4 }
  0x65   : > { %1548 = vmatprep.mubr.msk.bf16.mxu1 %vm757_vm0, %v1691_v5 }
  0x6b   : > { %1541 = vmatmul.mubr.msk.bf16.vlgmr.msra.gmra.mrb[32].mxu0 %vm757_vm0, %v1692_v6 }
  0x6c   : > { %1549 = vmatmul.mubr.msk.bf16.vlgmr.msra.gmra.mrb[32].mxu1 %vm757_vm0, %v1693_v7  ;;  %1544 = vmatprep.mubr.msk.bf16.mxu0 %vm757_vm0, %v1694_v8 }
  0x6d   : > { %1552 = vmatprep.mubr.msk.bf16.mxu1 %vm757_vm0, %v1695_v9 }
  0x73   : > { %1545 = vmatmul.mubr.msk.bf16.gmra.mrb[36].mxu0 %vm757_vm0, %v1696_v10 }
  0x74   : > { %1553 = vmatmul.mubr.msk.bf16.gmra.mrb[36].mxu1 %vm757_vm0, %v1697_v11 }
  0xfe   : > { %v1408_v12 = vpop.f32.mrb[0].mxu0 }
  0xff   : > { %v1472_v13 = vpop.f32.mrb[0].mxu1  ;;  %v1409_v15 = vpop.f32.mrb[1].mxu0 }
 0x100   : > { %v1410_v16 = vadd.f32 %v1409_v15, %v1408_v12  ;;  %v1473_v17 = vpop.f32.mrb[1].mxu1  ;;  %v1411_v18 = vpop.f32.mrb[2].mxu0 }
 0x101   : > { %v1474_v19 = vadd.f32 %v1473_v17, %v1472_v13  ;;  %v1475_v20 = vpop.f32.mrb[2].mxu1  ;;  %v1412_v21 = vpop.f32.mrb[3].mxu0 }
 0x102   : > { %v817_v22 = vadd.f32 %v1410_v16, %v1965_v14  ;;  %v1413_v23 = vadd.f32 %v1412_v21, %v1411_v18  ;;  %v1476_v24 = vpop.f32.mrb[3].mxu1 }
 0x103   : > { %v1477_v25 = vadd.f32 %v1476_v24, %v1475_v20 }
 0x104   : > { %v820_v26 = vadd.f32 %v1413_v23, %v1965_v14  ;;  %v1969_v27 = vadd.f32 %v1474_v19, %v817_v22 }
 0x106   : > { %v1414_v28 = vpop.f32.mrb[4].mxu0  ;;  %v1971_v29 = vadd.f32 %v1477_v25, %v820_v26 }
 0x107   : > { %v1478_v30 = vpop.f32.mrb[4].mxu1  ;;  %v1415_v31 = vpop.f32.mrb[5].mxu0 }
 0x108   : > { %v1416_v32 = vadd.f32 %v1415_v31, %v1414_v28  ;;  %v1479_v33 = vpop.f32.mrb[5].mxu1  ;;  %v1417_v34 = vpop.f32.mrb[6].mxu0 }
 0x109   : > { %v1480_v35 = vadd.f32 %v1479_v33, %v1478_v30  ;;  %v1481_v36 = vpop.f32.mrb[6].mxu1  ;;  %v1418_v37 = vpop.f32.mrb[7].mxu0 }
 0x10a   : > { %v825_v38 = vadd.f32 %v1416_v32, %v1965_v14  ;;  %v1419_v39 = vadd.f32 %v1418_v37, %v1417_v34  ;;  %v1482_v40 = vpop.f32.mrb[7].mxu1 }
 0x10b   : > { %v1483_v41 = vadd.f32 %v1482_v40, %v1481_v36 }
 0x10c   : > { %v828_v42 = vadd.f32 %v1419_v39, %v1965_v14  ;;  %v1975_v43 = vadd.f32 %v1480_v35, %v825_v38 }
 0x10e   : > { %v1420_v44 = vpop.f32.mrb[8].mxu0  ;;  %v1977_v45 = vadd.f32 %v1483_v41, %v828_v42 }
 0x10f   : > { %v1484_v46 = vpop.f32.mrb[8].mxu1  ;;  %v1421_v47 = vpop.f32.mrb[9].mxu0 }
 0x110   : > { %v1422_v48 = vadd.f32 %v1421_v47, %v1420_v44  ;;  %v1485_v49 = vpop.f32.mrb[9].mxu1  ;;  %v1423_v50 = vpop.f32.mrb[10].mxu0 }
 0x111   : > { %v1486_v51 = vadd.f32 %v1485_v49, %v1484_v46  ;;  %v1487_v52 = vpop.f32.mrb[10].mxu1  ;;  %v1424_v53 = vpop.f32.mrb[11].mxu0 }
 0x112   : > { %v833_v54 = vadd.f32 %v1422_v48, %v1965_v14  ;;  %v1425_v55 = vadd.f32 %v1424_v53, %v1423_v50  ;;  %v1488_v56 = vpop.f32.mrb[11].mxu1 }
 0x113   : > { %v1489_v57 = vadd.f32 %v1488_v56, %v1487_v52 }
 0x114   : > { %v836_v58 = vadd.f32 %v1425_v55, %v1965_v14  ;;  %v1981_v59 = vadd.f32 %v1486_v51, %v833_v54 }
 0x116   : > { %v1426_v60 = vpop.f32.mrb[12].mxu0  ;;  %v1983_v61 = vadd.f32 %v1489_v57, %v836_v58 }
 0x117   : > { %v1490_v62 = vpop.f32.mrb[12].mxu1  ;;  %v1427_v63 = vpop.f32.mrb[13].mxu0 }
 0x118   : > { %v1428_v0 = vadd.f32 %v1427_v63, %v1426_v60  ;;  %v1491_v1 = vpop.f32.mrb[13].mxu1  ;;  %v1429_v2 = vpop.f32.mrb[14].mxu0 }
 0x119   : > { %v1492_v3 = vadd.f32 %v1491_v1, %v1490_v62  ;;  %v1493_v4 = vpop.f32.mrb[14].mxu1  ;;  %v1430_v5 = vpop.f32.mrb[15].mxu0 }
 0x11a   : > { %v841_v6 = vadd.f32 %v1428_v0, %v1965_v14  ;;  %v1431_v7 = vadd.f32 %v1430_v5, %v1429_v2  ;;  %v1494_v8 = vpop.f32.mrb[15].mxu1 }
 0x11b   : > { %v1495_v9 = vadd.f32 %v1494_v8, %v1493_v4 }
 0x11c   : > { %v844_v10 = vadd.f32 %v1431_v7, %v1965_v14  ;;  %v1987_v11 = vadd.f32 %v1492_v3, %v841_v6 }
 0x11e   : > { %v1432_v12 = vpop.f32.mrb[16].mxu0  ;;  %v1989_v13 = vadd.f32 %v1495_v9, %v844_v10 }
 0x11f   : > { %v1496_v15 = vpop.f32.mrb[16].mxu1  ;;  %v1433_v16 = vpop.f32.mrb[17].mxu0 }
 0x120   : > { %v1434_v17 = vadd.f32 %v1433_v16, %v1432_v12  ;;  %v1497_v18 = vpop.f32.mrb[17].mxu1  ;;  %v1435_v19 = vpop.f32.mrb[18].mxu0 }
 0x121   : > { %v1498_v20 = vadd.f32 %v1497_v18, %v1496_v15  ;;  %v1499_v21 = vpop.f32.mrb[18].mxu1  ;;  %v1436_v22 = vpop.f32.mrb[19].mxu0 }
 0x122   : > { %v849_v23 = vadd.f32 %v1434_v17, %v1965_v14  ;;  %v1437_v24 = vadd.f32 %v1436_v22, %v1435_v19  ;;  %v1500_v25 = vpop.f32.mrb[19].mxu1 }
 0x123   : > { %v1501_v26 = vadd.f32 %v1500_v25, %v1499_v21 }
 0x124   : > { %v852_v28 = vadd.f32 %v1437_v24, %v1965_v14  ;;  %v1993_v30 = vadd.f32 %v1498_v20, %v849_v23 }
 0x126   : > { %v1438_v31 = vpop.f32.mrb[20].mxu0  ;;  %v1995_v32 = vadd.f32 %v1501_v26, %v852_v28 }
 0x127   : > { %v1502_v33 = vpop.f32.mrb[20].mxu1  ;;  %v1439_v34 = vpop.f32.mrb[21].mxu0 }
 0x128   : > { %v1440_v35 = vadd.f32 %v1439_v34, %v1438_v31  ;;  %v1503_v36 = vpop.f32.mrb[21].mxu1  ;;  %v1441_v37 = vpop.f32.mrb[22].mxu0 }
 0x129   : > { %v1504_v38 = vadd.f32 %v1503_v36, %v1502_v33  ;;  %v1505_v39 = vpop.f32.mrb[22].mxu1  ;;  %v1442_v40 = vpop.f32.mrb[23].mxu0 }
 0x12a   : > { %v857_v41 = vadd.f32 %v1440_v35, %v1965_v14  ;;  %v1443_v42 = vadd.f32 %v1442_v40, %v1441_v37  ;;  %v1506_v44 = vpop.f32.mrb[23].mxu1 }
 0x12b   : > { %v1507_v46 = vadd.f32 %v1506_v44, %v1505_v39 }
 0x12c   : > { %v860_v47 = vadd.f32 %v1443_v42, %v1965_v14  ;;  %v954_v48 = vadd.f32 %v1504_v38, %v857_v41 }
 0x12e   : > { %v1444_v49 = vpop.f32.mrb[24].mxu0  ;;  %v957_v50 = vadd.f32 %v1507_v46, %v860_v47 }
 0x12f   : > { %v1508_v51 = vpop.f32.mrb[24].mxu1  ;;  %v1445_v52 = vpop.f32.mrb[25].mxu0 }
 0x130   : > { %v1446_v53 = vadd.f32 %v1445_v52, %v1444_v49  ;;  %v1509_v54 = vpop.f32.mrb[25].mxu1  ;;  %v1447_v55 = vpop.f32.mrb[26].mxu0 }
 0x131   : > { %v1510_v56 = vadd.f32 %v1509_v54, %v1508_v51  ;;  %v1511_v57 = vpop.f32.mrb[26].mxu1  ;;  %v1448_v58 = vpop.f32.mrb[27].mxu0 }
 0x132   : > { %v865_v60 = vadd.f32 %v1446_v53, %v1965_v14  ;;  %v1449_v62 = vadd.f32 %v1448_v58, %v1447_v55  ;;  %v1512_v63 = vpop.f32.mrb[27].mxu1 }
 0x133   : > { %v1513_v0 = vadd.f32 %v1512_v63, %v1511_v57 }
 0x134   : > { %v868_v1 = vadd.f32 %v1449_v62, %v1965_v14  ;;  %v2001_v2 = vadd.f32 %v1510_v56, %v865_v60 }
 0x136   : > { %v1450_v3 = vpop.f32.mrb[28].mxu0  ;;  %v2003_v4 = vadd.f32 %v1513_v0, %v868_v1 }
 0x137   : > { %v1514_v5 = vpop.f32.mrb[28].mxu1  ;;  %v1451_v6 = vpop.f32.mrb[29].mxu0 }
 0x138   : > { %v1452_v7 = vadd.f32 %v1451_v6, %v1450_v3  ;;  %v1515_v8 = vpop.f32.mrb[29].mxu1  ;;  %v1453_v9 = vpop.f32.mrb[30].mxu0 }
 0x139   : > { %v1516_v10 = vadd.f32 %v1515_v8, %v1514_v5  ;;  %v1517_v12 = vpop.f32.mrb[30].mxu1  ;;  %v1454_v15 = vpop.f32.mrb[31].mxu0 }
 0x13a   : > { %v873_v16 = vadd.f32 %v1452_v7, %v1965_v14  ;;  %v1455_v17 = vadd.f32 %v1454_v15, %v1453_v9  ;;  %v1518_v18 = vpop.f32.mrb[31].mxu1 }
 0x13b   : > { %v1519_v19 = vadd.f32 %v1518_v18, %v1517_v12 }
 0x13c   : > { %v876_v20 = vadd.f32 %v1455_v17, %v1965_v14  ;;  %v970_v21 = vadd.f32 %v1516_v10, %v873_v16 }
 0x13e   : > { %v1542_v22 = vpop.f32.mrb[32].mxu0  ;;  %v973_v23 = vadd.f32 %v1519_v19, %v876_v20 }
 0x13f   : > { %v1019_v24 = vadd.f32 %v1542_v22, %v1975_v43  ;;  %v1550_v25 = vpop.f32.mrb[32].mxu1  ;;  %v1010_v26 = vpop.f32.mrb[33].mxu0 }
 0x140   : > { %v1051_v28 = vadd.f32 %v1550_v25, %v954_v48  ;;  %v1011_v31 = vadd.f32 %v1010_v26, %v1969_v27  ;;  %v1042_v33 = vpop.f32.mrb[33].mxu1  ;;  %v1543_v34 = vpop.f32.mrb[34].mxu0 }
 0x141   : > { %v1075_v35 = vmax.f32 %v1019_v24, 0.0  ;;  %v1043_v36 = vadd.f32 %v1042_v33, %v1993_v30  ;;  %v1022_v14 = vadd.f32 %v1543_v34, %v1977_v45  ;;  %v1551_v37 = vpop.f32.mrb[34].mxu1  ;;  %v1013_v38 = vpop.f32.mrb[35].mxu0 }
 0x142   : > { %v1083_v43 = vmax.f32 %v1051_v28, 0.0  ;;  %v1073_v39 = vmax.f32 %v1011_v31, 0.0  ;;  %v1054_v27 = vadd.f32 %v1551_v37, %v957_v50  ;;  %v1014_v40 = vadd.f32 %v1013_v38, %v1971_v29  ;;  %v1045_v41 = vpop.f32.mrb[35].mxu1 }
 0x143   : > { %v1378_v42 = vpack.c.bf16 %v1075_v35, %v1075_v35  ;;  %v1081_v30 = vmax.f32 %v1043_v36, 0.0  ;;  %v1076_v45 = vmax.f32 %v1022_v14, 0.0  ;;  %v1046_v44 = vadd.f32 %v1045_v41, %v1995_v32 }
 0x144   : > { %v1386_v46 = vpack.c.bf16 %v1083_v43, %v1083_v43  ;;  %v1376_v47 = vpack.c.bf16 %v1073_v39, %v1073_v39  ;;  %v1084_v48 = vmax.f32 %v1054_v27, 0.0  ;;  %v1074_v49 = vmax.f32 %v1014_v40, 0.0 }
 0x145   : > { %1156 = vst.msk [vmem:[%s2016_s24 + $0x8] sm:$0xf] %vm1153_vm1, %v1378_v42  ;;  %v1384_v50 = vpack.c.bf16 %v1081_v30, %v1081_v30  ;;  %v1379_v51 = vpack.c.bf16 %v1076_v45, %v1076_v45  ;;  %v1082_v52 = vmax.f32 %v1046_v44, 0.0 }
 0x146   : > { %1164 = vst.msk [vmem:[%s2016_s24 + $0x28] sm:$0xf] %vm1153_vm1, %v1386_v46  ;;  %1154 = vst.msk [vmem:[%s2016_s24] sm:$0xf] %vm1153_vm1, %v1376_v47  ;;  %v1387_v29 = vpack.c.bf16 %v1084_v48, %v1084_v48  ;;  %v1377_v53 = vpack.c.bf16 %v1074_v49, %v1074_v49  ;;  %v1546_v54 = vpop.f32.mrb[36].mxu0 }
 0x147   : > { %1162 = vst.msk [vmem:[%s2016_s24 + $0x20] sm:$0xf] %vm1153_vm1, %v1384_v50  ;;  %1157 = vst.msk [vmem:[%s2016_s24 + $0xc] sm:$0xf] %vm1153_vm1, %v1379_v51  ;;  %v1385_v32 = vpack.c.bf16 %v1082_v52, %v1082_v52  ;;  %v1035_v55 = vadd.f32 %v1546_v54, %v1987_v11  ;;  %v1554_v56 = vpop.f32.mrb[36].mxu1  ;;  %v1026_v57 = vpop.f32.mrb[37].mxu0 }
 0x148   : > { %1165 = vst.msk [vmem:[%s2016_s24 + $0x2c] sm:$0xf] %vm1153_vm1, %v1387_v29  ;;  %1155 = vst.msk [vmem:[%s2016_s24 + $0x4] sm:$0xf] %vm1153_vm1, %v1377_v53  ;;  %v1067_v58 = vadd.f32 %v1554_v56, %v970_v21  ;;  %v1027_v60 = vadd.f32 %v1026_v57, %v1981_v59  ;;  %v1058_v62 = vpop.f32.mrb[37].mxu1  ;;  %v1547_v63 = vpop.f32.mrb[38].mxu0 }
 0x149   : > { %1163 = vst.msk [vmem:[%s2016_s24 + $0x24] sm:$0xf] %vm1153_vm1, %v1385_v32  ;;  %v1079_v0 = vmax.f32 %v1035_v55, 0.0  ;;  %v1059_v1 = vadd.f32 %v1058_v62, %v2001_v2  ;;  %v1038_v3 = vadd.f32 %v1547_v63, %v1989_v13  ;;  %v1555_v11 = vpop.f32.mrb[38].mxu1  ;;  %v1029_v5 = vpop.f32.mrb[39].mxu0 }
 0x14a   : > { %v1087_v6 = vmax.f32 %v1067_v58, 0.0  ;;  %v1077_v7 = vmax.f32 %v1027_v60, 0.0  ;;  %v1070_v8 = vadd.f32 %v1555_v11, %v973_v23  ;;  %v1030_v9 = vadd.f32 %v1029_v5, %v1983_v61  ;;  %v1061_v59 = vpop.f32.mrb[39].mxu1 }
 0x14b   : > { %v1382_v10 = vpack.c.bf16 %v1079_v0, %v1079_v0  ;;  %v1085_v12 = vmax.f32 %v1059_v1, 0.0  ;;  %v1080_v15 = vmax.f32 %v1038_v3, 0.0  ;;  %v1062_v2 = vadd.f32 %v1061_v59, %v2003_v4 }
 0x14c   : > { %v1390_v13 = vpack.c.bf16 %v1087_v6, %v1087_v6  ;;  %v1380_v16 = vpack.c.bf16 %v1077_v7, %v1077_v7  ;;  %v1088_v17 = vmax.f32 %v1070_v8, 0.0  ;;  %v1078_v18 = vmax.f32 %v1030_v9, 0.0 }
 0x14d   : > { %1160 = vst.msk [vmem:[%s2016_s24 + $0x18] sm:$0xf] %vm1153_vm1, %v1382_v10  ;;  %v1388_v19 = vpack.c.bf16 %v1085_v12, %v1085_v12  ;;  %v1383_v20 = vpack.c.bf16 %v1080_v15, %v1080_v15  ;;  %v1086_v61 = vmax.f32 %v1062_v2, 0.0 }
 0x14e   : > { %1168 = vst.msk [vmem:[%s2016_s24 + $0x38] sm:$0xf] %vm1153_vm1, %v1390_v13  ;;  %1158 = vst.msk [vmem:[%s2016_s24 + $0x10] sm:$0xf] %vm1153_vm1, %v1380_v16  ;;  %v1391_v21 = vpack.c.bf16 %v1088_v17, %v1088_v17  ;;  %v1381_v22 = vpack.c.bf16 %v1078_v18, %v1078_v18 }
 0x14f   : > { %1166 = vst.msk [vmem:[%s2016_s24 + $0x30] sm:$0xf] %vm1153_vm1, %v1388_v19  ;;  %1161 = vst.msk [vmem:[%s2016_s24 + $0x1c] sm:$0xf] %vm1153_vm1, %v1383_v20  ;;  %v1389_v4 = vpack.c.bf16 %v1086_v61, %v1086_v61 }
 0x150   : > { %1169 = vst.msk [vmem:[%s2016_s24 + $0x3c] sm:$0xf] %vm1153_vm1, %v1391_v21  ;;  %1159 = vst.msk [vmem:[%s2016_s24 + $0x14] sm:$0xf] %vm1153_vm1, %v1381_v22 }
 0x151   : > { %1167 = vst.msk [vmem:[%s2016_s24 + $0x34] sm:$0xf] %vm1153_vm1, %v1389_v4 }
 0x152 PF: > { %s13_s16 = sadd.s32 1, %s1736_s16   ;;  %s2077_s12 = smov %s1728_s14 }
 0x153   : > { %p10_p7 = scmp.ge.s32.totalorder %s13_s16, 6   ;;  %s2078_s13 = smov %s1732_s15 }
 0x154   : > { %s2079_s14 = smov %s2082_s17  ;;  %s2080_s15 = smov %s2086_s18 }
 0x155   :  { %12 = sbr.rel (!%p10_p7) target bundleno = 3 (0x3), region = 62 }

// kernel: regress_flow_b_v2_forward.3
= control target key start
LH: loop header
LB: loop body
LE: loop exit
PB: predicated region body
PF: predicated region fallthrough
CT: control target
= control target key end

     0   :  { %s1027_s15 = smov 0   ;;  %s1163_s0 = inlined_call_operand.vmem [shape: bf16[2,64,288], index: 0, kind: input, shape index: {}]   ;;  %s1164_s1 = inlined_call_operand.vmem [shape: bf16[288,8], index: 1, kind: input, shape index: {}]   ;;  %s1165_s2 = inlined_call_operand.vmem [shape: f32[1,8], index: 2, kind: input, shape index: {}]   ;;  %s1166_s3 = inlined_call_operand.vmem [shape: f32[64,64], index: 3, kind: input, shape index: {}]   ;;  %s1167_s4 = inlined_call_operand.vmem [shape: f32[2,64,8], index: 4, kind: output, shape index: {}]  }
   0x1 LB: > { %s779_s16 = sadd.s32 4294967295, %s1000_s15   ;;  %p783_p0 = scmp.ge.s32.totalorder %s1000_s15, 1  ;;  %s1000_s15 = sphi %s1027_s15, %s14_s15  }
   0x2   : > { %p162_p1 = scmp.lt.s32.totalorder %s1000_s15, 3 }
   0x4   : > { %p163_p2 = pnand %p783_p0, %p162_p1 }
   0x5   : > { %v960_v0 = vld [vmem:[%s1164_s1 + $0x40] sm:$0xff] (!%p163_p2)   ;;  %v962_v2 = vld [vmem:[%s1164_s1 + $0x48] sm:$0xff] (!%p163_p2)   ;;  %p188_p3 = scmp.lt.s32.totalorder (!%p163_p2), %s779_s16, 1  ;;  %v964_v4 = vld [vmem:[%s1164_s1 + $0x50] sm:$0xff] (!%p163_p2)   ;;  %vm426_vm0 = vcmask (!%p163_p2), 261120   ;;  %vm585_vm1 = vcmask (!%p163_p2), 523264  }
   0x6   : > { %166 = sbr.rel (%p163_p2) target bundleno = 517 (0x205), region = 36  ;;  %v961_v1 = vld [vmem:[%s1164_s1] sm:$0xff] (!%p163_p2)   ;;  %833 = vmatprep.subr.bf16.mxu0 (!%p163_p2), %v960_v0  ;;  %v963_v3 = vld [vmem:[%s1164_s1 + $0x8] sm:$0xff] (!%p163_p2)   ;;  %v965_v5 = vld [vmem:[%s1164_s1 + $0x10] sm:$0xff] (!%p163_p2)   ;;  %vm715_vm2 = vcmask (!%p163_p2), 64512  }
   0x7   : > { %834 = vmatpush3.bf16.msra.mxu0 (!%p163_p2), %v961_v1  ;;  %v966_v6 = vld [vmem:[%s1164_s1 + $0x58] sm:$0xff] (!%p163_p2)   ;;  %v968_v8 = vld [vmem:[%s1164_s1 + $0x60] sm:$0xff] (!%p163_p2)   ;;  %v970_v11 = vld [vmem:[%s1164_s1 + $0x68] sm:$0xff] (!%p163_p2)  }
   0x8   : > { %835 = vmatprep.subr.bf16.mxu0 (!%p163_p2), %v962_v2  ;;  %v967_v7 = vld [vmem:[%s1164_s1 + $0x18] sm:$0xff] (!%p163_p2)   ;;  %v969_v9 = vld [vmem:[%s1164_s1 + $0x20] sm:$0xff] (!%p163_p2)   ;;  %v971_v12 = vld [vmem:[%s1164_s1 + $0x28] sm:$0xff] (!%p163_p2)  }
   0x9   : > { %v975_v10 = vld [vmem:[%s1164_s1 + $0x80] sm:$0xff] (!%p163_p2)   ;;  %v972_v13 = vld [vmem:[%s1164_s1 + $0x70] sm:$0xff] (!%p163_p2)   ;;  %v980_v15 = vld [vmem:[%s1164_s1 + $0x88] sm:$0xff] (!%p163_p2)  }
   0xa   : > { %895 = vmatprep.subr.bf16.mxu1 (!%p163_p2), %v975_v10  ;;  %v973_v18 = vld [vmem:[%s1164_s1 + $0x30] sm:$0xff] (!%p163_p2)   ;;  %v974_v19 = vld [vmem:[%s1164_s1 + $0x78] sm:$0xff] (!%p163_p2)   ;;  %v577_v30 = vld [vmem:[%s1166_s3] sm:$0xff] (!%p163_p2) }
   0xb   : > { %836 = vmatpush3.bf16.msra.mxu0 (!%p163_p2), %v963_v3  ;;  %896 = vmatpush3.bf16.msra.mxu1 (!%p163_p2), %v975_v10  ;;  %v976_v21 = vld [vmem:[%s1164_s1 + $0x38] sm:$0xff] (!%p163_p2)   ;;  %v787_v39 = vld [vmem:[%s1165_s2] ss:$0 sm:$0xff] (!%p163_p2) }
   0xc   : > { %837 = vmatprep.subr.bf16.mxu0 (!%p163_p2), %v964_v4  ;;  %897 = vmatprep.subr.bf16.mxu1 (!%p163_p2), %v980_v15 }
   0xd   : > { %s1169_s16 = smov (!%p188_p3, %s779_s16), 1 }
   0xe   : > { %s951_s7 = smul.u32 96, %s1169_s16  ;;  %s832_s27 = sshll.u32 %s1169_s16, 6 }
   0xf   : > { %838 = vmatpush3.bf16.msra.mxu0 %v965_v5  ;;  %898 = vmatpush3.bf16.msra.mxu1 %v980_v15  ;;  %s197_s30 = scalar_lea.vmem %s1167_s4, %s832_s27 }
  0x10   : > { %839 = vmatprep.subr.bf16.mxu0 %v966_v6  ;;  %s1074_s18 = scalar_lea.vmem %s1163_s0, %s951_s7 }
  0x11   : > { %v979_v14 = vld [vmem:[%s1074_s18 + $0x4] ss:$12 sps:$4 sm:$0xff]   ;;  %v981_v16 = vld [vmem:[%s1074_s18 + $0x8] ss:$12 sps:$4 sm:$0xff]   ;;  %v982_v17 = vld [vmem:[%s1074_s18 + $0x20] ss:$12 sps:$4 sm:$0xff]  }
  0x12   : > { %471 = vmatprep.mubr.bf16.mxu0 %v979_v14  ;;  %899 = vmatprep.mubr.msk.bf16.mxu1 %vm426_vm0, %v981_v16  ;;  %v989_v20 = vld [vmem:[%s1074_s18 + $0x38] ss:$12 sps:$4 sm:$0xff]   ;;  %v990_v22 = vld [vmem:[%s1074_s18 + $0x50] ss:$12 sps:$4 sm:$0xff]   ;;  %v977_v23 = vld [vmem:[%s1074_s18] ss:$12 sps:$4 sm:$0xff]  }
  0x13   : > { %840 = vmatpush3.bf16.msra.mxu0 %v967_v7  ;;  %900 = vmatmul.mubr.msk.bf16.vlgmr.msra.gmra.mrb[0].mxu1 %vm426_vm0, %v982_v17  ;;  %v983_v24 = vld [vmem:[%s1074_s18 + $0x1c] ss:$12 sps:$4 sm:$0xff]   ;;  %v985_v25 = vld [vmem:[%s1074_s18 + $0x18] ss:$12 sps:$4 sm:$0xff]   ;;  %v986_v26 = vld [vmem:[%s1074_s18 + $0x34] ss:$12 sps:$4 sm:$0xff]  }
  0x14   : > { %841 = vmatprep.subr.bf16.mxu0 %v968_v8  ;;  %903 = vmatprep.mubr.msk.bf16.mxu1 %vm426_vm0, %v989_v20  ;;  %v988_v27 = vld [vmem:[%s1074_s18 + $0x30] ss:$12 sps:$4 sm:$0xff]   ;;  %v991_v28 = vld [vmem:[%s1074_s18 + $0x4c] ss:$12 sps:$4 sm:$0xff]   ;;  %v993_v29 = vld [vmem:[%s1074_s18 + $0x48] ss:$12 sps:$4 sm:$0xff]  }
  0x17   : > { %842 = vmatpush3.bf16.msra.mxu0 %v969_v9 }
  0x18   : > { %843 = vmatprep.subr.bf16.mxu0 %v970_v11 }
  0x1b   : > { %844 = vmatpush3.bf16.msra.mxu0 %v971_v12  ;;  %904 = vmatmul.mubr.msk.bf16.gmra.mrb[4].mxu1 %vm426_vm0, %v990_v22 }
  0x1c   : > { %845 = vmatprep.subr.bf16.mxu0 %v972_v13  ;;  %923 = vmatprep.mubr.msk.f32.mxu1 %vm585_vm1, %v577_v30  ;;  %v580_v30 = vld [vmem:[%s1166_s3 + $0x18] sm:$0xff] }
  0x1f   : > { %846 = vmatpush3.bf16.msra.mxu0 %v973_v18 }
  0x20   : > { %847 = vmatprep.subr.bf16.mxu0 %v974_v19 }
  0x23   : > { %848 = vmatpush3.bf16.msra.mxu0 %v976_v21 }
  0x26   : > { %472 = vmatmul.mubr.bf16.vlgmr.msra.gmra.mrb[0].mxu0 %v977_v23 }
  0x27   : > { %479 = vmatprep.mubr.bf16.mxu0 %v983_v24 }
  0x2e   : > { %480 = vmatmul.mubr.bf16.gmra.mrb[4].mxu0 %v985_v25 }
  0x2f   : > { %487 = vmatprep.mubr.bf16.mxu0 %v986_v26 }
  0x36   : > { %488 = vmatmul.mubr.bf16.gmra.mrb[8].mxu0 %v988_v27 }
  0x37   : > { %495 = vmatprep.mubr.bf16.mxu0 %v991_v28  ;;  %v578_v28 = vld [vmem:[%s1166_s3 + $0x8] sm:$0xff] }
  0x3e   : > { %496 = vmatmul.mubr.bf16.gmra.mrb[12].mxu0 %v993_v29  ;;  %v579_v29 = vld [vmem:[%s1166_s3 + $0x10] sm:$0xff] }
  0xe6   : > { %v901_v31 = vpop.f32.mrb[0].mxu1 }
  0xe7   : > { %v538_v32 = vpop.f32.mrb[1].mxu1 }
  0xe8   : > { %v902_v33 = vpop.f32.mrb[2].mxu1 }
  0xe9   : > { %v541_v34 = vpop.f32.mrb[3].mxu1 }
  0xee   : > { %v905_v35 = vpop.f32.mrb[4].mxu1 }
  0xef   : > { %v554_v37 = vpop.f32.mrb[5].mxu1 }
  0xf0   : > { %v906_v40 = vpop.f32.mrb[6].mxu1 }
  0xf1   : > { %v557_v43 = vpop.f32.mrb[7].mxu1 }
  0xf9   : > { %v849_v36 = vpop.f32.mrb[0].mxu0 }
  0xfa   : > { %v850_v38 = vpop.f32.mrb[1].mxu0 }
  0xfb   : > { %v851_v41 = vadd.f32 %v850_v38, %v849_v36  ;;  %v852_v42 = vpop.f32.mrb[2].mxu0 }
  0xfc   : > { %v853_v44 = vpop.f32.mrb[3].mxu0 }
  0xfd   : > { %v854_v45 = vadd.f32 %v853_v44, %v852_v42  ;;  %v474_v46 = vadd.f32 %v851_v41, %v787_v39 }
  0xff   : > { %v539_v47 = vadd.f32 %v538_v32, %v474_v46  ;;  %v477_v48 = vadd.f32 %v854_v45, %v787_v39  ;;  %v582_v32 = vld [vmem:[%s1166_s3 + $0x28] sm:$0xff] }
 0x101   : > { %v542_v49 = vadd.f32 %v541_v34, %v477_v48  ;;  %v855_v50 = vpop.f32.mrb[4].mxu0  ;;  %v569_v52 = vmax.f32 %v539_v47, 0.0  ;;  %v584_v34 = vld [vmem:[%s1166_s3 + $0x38] sm:$0xff] }
 0x102   : > { %v856_v51 = vpop.f32.mrb[5].mxu0 }
 0x103   : > { %v570_v53 = vmax.f32 %v542_v49, 0.0  ;;  %v857_v54 = vadd.f32 %v856_v51, %v855_v50  ;;  %v858_v55 = vpop.f32.mrb[6].mxu0 }
 0x104   : > { %v859_v56 = vpop.f32.mrb[7].mxu0 }
 0x105   : > { %v935_v57 = vpack.c.bf16 %v570_v53, %v569_v52  ;;  %v482_v58 = vadd.f32 %v857_v54, %v787_v39  ;;  %v860_v59 = vadd.f32 %v859_v56, %v858_v55 }
 0x107   : > { %v547_v60 = vadd.f32 %v901_v31, %v482_v58  ;;  %v485_v61 = vadd.f32 %v860_v59, %v787_v39  ;;  %936 = vmatprep.subr.bf16.mxu1 %v935_v57  ;;  %v581_v31 = vld [vmem:[%s1166_s3 + $0x20] sm:$0xff] }
 0x108   : > { %938 = vmatpush3.bf16.msra.mxu1 %v935_v57 }
 0x109   : > { %v550_v62 = vadd.f32 %v902_v33, %v485_v61  ;;  %v861_v63 = vpop.f32.mrb[8].mxu0  ;;  %v571_v1 = vmax.f32 %v547_v60, 0.0  ;;  %v583_v33 = vld [vmem:[%s1166_s3 + $0x30] sm:$0xff] }
 0x10a   : > { %v862_v0 = vpop.f32.mrb[9].mxu0 }
 0x10b   : > { %v572_v2 = vmax.f32 %v550_v62, 0.0  ;;  %v863_v3 = vadd.f32 %v862_v0, %v861_v63  ;;  %v864_v4 = vpop.f32.mrb[10].mxu0 }
 0x10c   : > { %v865_v5 = vpop.f32.mrb[11].mxu0 }
 0x10d   : > { %v866_v6 = vadd.f32 %v865_v5, %v864_v4  ;;  %v490_v7 = vadd.f32 %v863_v3, %v787_v39  ;;  %v939_v8 = vpack.c.bf16 %v572_v2, %v571_v1 }
 0x10f   : > { %v555_v9 = vadd.f32 %v554_v37, %v490_v7  ;;  %940 = vmatprep.subr.bf16.mxu1 %v939_v8  ;;  %v493_v10 = vadd.f32 %v866_v6, %v787_v39 }
 0x110   : > { %942 = vmatpush3.bf16.msra.mxu1 %v939_v8 }
 0x111   : > { %v558_v11 = vadd.f32 %v557_v43, %v493_v10  ;;  %v867_v12 = vpop.f32.mrb[12].mxu0  ;;  %v573_v14 = vmax.f32 %v555_v9, 0.0 }
 0x112   : > { %v868_v13 = vpop.f32.mrb[13].mxu0 }
 0x113   : > { %v574_v15 = vmax.f32 %v558_v11, 0.0  ;;  %v869_v16 = vadd.f32 %v868_v13, %v867_v12  ;;  %v870_v17 = vpop.f32.mrb[14].mxu0 }
 0x114   : > { %v871_v18 = vpop.f32.mrb[15].mxu0 }
 0x115   : > { %v943_v19 = vpack.c.bf16 %v574_v15, %v573_v14  ;;  %v498_v20 = vadd.f32 %v869_v16, %v787_v39  ;;  %v872_v21 = vadd.f32 %v871_v18, %v870_v17 }
 0x117   : > { %v563_v22 = vadd.f32 %v905_v35, %v498_v20  ;;  %v501_v23 = vadd.f32 %v872_v21, %v787_v39  ;;  %944 = vmatprep.subr.bf16.mxu1 %v943_v19 }
 0x118   : > { %946 = vmatpush3.bf16.msra.mxu1 %v943_v19 }
 0x119   : > { %v566_v24 = vadd.f32 %v906_v40, %v501_v23  ;;  %v575_v25 = vmax.f32 %v563_v22, 0.0 }
 0x11b   : > { %v576_v26 = vmax.f32 %v566_v24, 0.0 }
 0x11d   : > { %v947_v27 = vpack.c.bf16 %v576_v26, %v575_v25 }
 0x11f   : > { %948 = vmatprep.subr.bf16.mxu1 %v947_v27 }
 0x120   : > { %950 = vmatpush3.bf16.msra.mxu1 %v947_v27 }
 0x123   : > { %924 = vmatmul.mubr.msk.f32.vlgmr.msra.gmra.mrb[8].mxu1 %vm585_vm1, %v578_v28 }
 0x124   : > { %926 = vmatprep.mubr.msk.f32.mxu1 %vm585_vm1, %v579_v29 }
 0x127   : > { %927 = vmatmul.mubr.msk.f32.gmra.mrb[10].mxu1 %vm585_vm1, %v580_v30 }
 0x128   : > { %929 = vmatprep.mubr.msk.f32.mxu1 %vm585_vm1, %v581_v31 }
 0x12b   : > { %930 = vmatmul.mubr.msk.f32.gmra.mrb[12].mxu1 %vm585_vm1, %v582_v32 }
 0x12c   : > { %932 = vmatprep.mubr.msk.f32.mxu1 %vm585_vm1, %v583_v33 }
 0x12f   : > { %933 = vmatmul.mubr.msk.f32.gmra.mrb[14].mxu1 %vm585_vm1, %v584_v34 }
 0x1f6   : > { %v925_v35 = vpop.f32.mrb[8].mxu1 }
 0x1f7   : > { %717 = vst.msk [vmem:[%s197_s30 + $0x8] sm:$0xff] %vm715_vm2, %v925_v35  ;;  %v676_v36 = vpop.f32.mrb[9].mxu1 }
 0x1f8   : > { %716 = vst.msk [vmem:[%s197_s30] sm:$0xff] %vm715_vm2, %v676_v36 }
 0x1fa   : > { %v928_v37 = vpop.f32.mrb[10].mxu1 }
 0x1fb   : > { %719 = vst.msk [vmem:[%s197_s30 + $0x18] sm:$0xff] %vm715_vm2, %v928_v37  ;;  %v686_v38 = vpop.f32.mrb[11].mxu1 }
 0x1fc   : > { %718 = vst.msk [vmem:[%s197_s30 + $0x10] sm:$0xff] %vm715_vm2, %v686_v38 }
 0x1fe   : > { %v931_v39 = vpop.f32.mrb[12].mxu1 }
 0x1ff   : > { %721 = vst.msk [vmem:[%s197_s30 + $0x28] sm:$0xff] %vm715_vm2, %v931_v39  ;;  %v696_v40 = vpop.f32.mrb[13].mxu1 }
 0x200   : > { %720 = vst.msk [vmem:[%s197_s30 + $0x20] sm:$0xff] %vm715_vm2, %v696_v40 }
 0x202   : > { %v934_v41 = vpop.f32.mrb[14].mxu1 }
 0x203   : > { %723 = vst.msk [vmem:[%s197_s30 + $0x38] sm:$0xff] %vm715_vm2, %v934_v41  ;;  %v706_v42 = vpop.f32.mrb[15].mxu1 }
 0x204   : > { %722 = vst.msk [vmem:[%s197_s30 + $0x30] sm:$0xff] %vm715_vm2, %v706_v42 }
 0x205 PF: > { %s14_s15 = sadd.s32 1, %s1000_s15  }
 0x206   : > { %p11_p4 = scmp.ge.s32.totalorder %s14_s15, 4  }
 0x208   :  { %13 = sbr.rel (!%p11_p4) target bundleno = 1 (0x1), region = 66 }

</bundles_post_ra>
